<compile_context>
chip_gen: v7x
topology: tpu7x:2x2x1
jax: 0.10.0
libtpu: 0.0.40
codegen_flags: <defaults>
</compile_context>

<pallas_src>
import functools

import jax
import jax.numpy as jnp
from jax.experimental import pallas as pl
from jax.experimental.pallas import tpu as pltpu


# -----------------------------------------------------------------------------
# Pallas kernel
# -----------------------------------------------------------------------------
def _rmse_partial_kernel(x_ref, y_ref, o_ref, *, total_rows, rows_per_block):
    """Partial sum of (x - y)**2 over one (rows_per_block, W) tile.

    x_ref / y_ref: (rows_per_block, W) input tiles (native dtype).
    o_ref:         (1, 8, 128) lane-dense partial-sum block (scalar broadcast).
    """
    x = x_ref[...].astype(jnp.float32)
    y = y_ref[...].astype(jnp.float32)
    d = x - y
    d2 = d * d

    # Mask the out-of-bounds tail rows of the last block (only emitted when
    # the block size does not divide the row count).
    if total_rows % rows_per_block != 0:
        start = pl.program_id(0) * rows_per_block
        row_ids = start + jax.lax.broadcasted_iota(jnp.int32, d2.shape, 0)
        d2 = jnp.where(row_ids < total_rows, d2, 0.0)

    s = jnp.sum(d2)
    o_ref[...] = jnp.full(o_ref.shape, s, o_ref.dtype)


# -----------------------------------------------------------------------------
# Tile-size / VMEM selection
# -----------------------------------------------------------------------------
def _vmem_info():
    """(budget for double-buffered 2-input footprint, physical VMEM bytes)."""
    phys = None
    try:
        info = pltpu.get_tpu_info()
        phys = getattr(info, "vmem_capacity_bytes", None)
    except Exception:
        phys = None
    if not phys:
        phys = 64 << 20                      # conservative: v7x per-TensorCore
    budget = min(24 << 20, phys // 3)        # ~4-6 MiB per input tile
    return budget, phys


def _choose_rows_per_block(total_rows, width, itemsize, budget_bytes):
    """Largest row count whose 2-input double-buffered footprint fits budget."""
    per_row = 4 * width * itemsize           # 2 inputs x 2 pipeline buffers
    rows = max(8, budget_bytes // per_row)
    rows = int(rows) - int(rows) % 8         # sublane rule: multiple of 8

    # Keep >= 2 grid steps so both v7x TensorCores get work.
    if total_rows >= 16:
        half = -(-total_rows // 2)
        half = ((half + 7) // 8) * 8
        rows = min(rows, half)

    # Never bigger than the (8-padded) array itself.
    rows = min(rows, ((total_rows + 7) // 8) * 8)
    if total_rows < 8:
        rows = total_rows                    # block == full dim is always legal
    return max(rows, 1)


# -----------------------------------------------------------------------------
# Wrapper
# -----------------------------------------------------------------------------
def rmse_2d(img1, img2):
    """Pallas implementation of RMSE_2d.forward.  img1/img2: [N, C, H, W]."""
    assert img1.shape == img2.shape and img1.ndim == 4
    N, C, H, W = img1.shape
    R = N * C * H

    # Free reshape (row-major collapse of leading dims) -> contiguous stream.
    x2 = img1.reshape(R, W)
    y2 = img2.reshape(R, W)
    itemsize = jnp.dtype(img1.dtype).itemsize

    budget, phys = _vmem_info()
    rows_per_block = _choose_rows_per_block(R, W, itemsize, budget)
    n_blocks = pl.cdiv(R, rows_per_block)

    footprint = 4 * rows_per_block * W * itemsize
    vmem_limit = int(min(phys - (8 << 20), max(32 << 20, footprint + (8 << 20))))

    in_spec = pl.BlockSpec((rows_per_block, W), lambda i: (i, 0))
    partial = pl.pallas_call(
        functools.partial(_rmse_partial_kernel,
                          total_rows=R, rows_per_block=rows_per_block),
        out_shape=jax.ShapeDtypeStruct((n_blocks, 8, 128), jnp.float32),
        grid=(n_blocks,),
        in_specs=[in_spec, in_spec],
        out_specs=pl.BlockSpec((1, 8, 128), lambda i: (i, 0, 0)),
        compiler_params=pltpu.CompilerParams(
            dimension_semantics=("parallel",),
            vmem_limit_bytes=vmem_limit),
    )(x2, y2)

    # Tiny epilogue (n_blocks scalars): apply the hoisted 128 factor, the mean
    # over N*H*W (== sum over C then mean), and the sqrt in plain JAX.
    total = jnp.sum(partial[:, 0, 0])
    return 128.0 * jnp.sqrt(total / float(N * H * W))


# -----------------------------------------------------------------------------
# main
# -----------------------------------------------------------------------------
if __name__ == "__main__":
    key = jax.random.PRNGKey(0)
    k1, k2 = jax.random.split(key)

    N, C, H, W = 2, 3, 16, 16
    img1 = jax.random.uniform(k1, (N, C, H, W), jnp.float32, -1.0, 1.0)
    img2 = jax.random.uniform(k2, (N, C, H, W), jnp.float32, -1.0, 1.0)

    out = rmse_2d(img1, img2)
    jax.block_until_ready(out)

    # Plain-JAX reference (exact PyTorch forward semantics).
    a = img1 * 128.0 + 128.0
    b = img2 * 128.0 + 128.0
    ref = jnp.sqrt(jnp.mean(jnp.sum((a - b) ** 2, axis=1)))

    assert bool(jnp.isfinite(out))
    assert bool(jnp.allclose(out, ref, rtol=1e-4, atol=1e-4)), (out, ref)
    print("KERNEL_OK")
</pallas_src>

<mosaic_0001>
module attributes {stable_mosaic.version = 11 : i64} {
  func.func @_rmse_partial_kernel(%arg0: i32, %arg1: memref<48x16xf32, #tpu.memory_space<vmem>>, %arg2: memref<48x16xf32, #tpu.memory_space<vmem>>, %arg3: memref<1x8x128xf32, #tpu.memory_space<vmem>>) attributes {dimension_semantics = [#tpu.dimension_semantics<parallel>], iteration_bounds = array<i64: 2>, scalar_prefetch = 0 : i64, scratch_operands = 0 : i64, tpu.core_type = #tpu.core_type<tc>, window_params = [{transform_indices = @transform_0, window_bounds = array<i64: 48, 16>}, {transform_indices = @transform_1, window_bounds = array<i64: 48, 16>}, {transform_indices = @transform_2, window_bounds = array<i64: 1, 8, 128>}]} {
    %c0 = arith.constant 0 : index
    %c0_0 = arith.constant 0 : index
    %0 = vector.load %arg1[%c0, %c0_0] : memref<48x16xf32, #tpu.memory_space<vmem>>, vector<48x16xf32>
    %c0_1 = arith.constant 0 : index
    %c0_2 = arith.constant 0 : index
    %1 = vector.load %arg2[%c0_1, %c0_2] : memref<48x16xf32, #tpu.memory_space<vmem>>, vector<48x16xf32>
    %2 = arith.subf %0, %1 : vector<48x16xf32>
    %3 = arith.mulf %2, %2 : vector<48x16xf32>
    %4 = vector.shape_cast %3 : vector<48x16xf32> to vector<1x48x16xf32>
    %cst = arith.constant dense<0.000000e+00> : vector<1xf32>
    %5 = vector.multi_reduction <add>, %4, %cst [1, 2] : vector<1x48x16xf32> to vector<1xf32>
    %6 = vector.shape_cast %5 : vector<1xf32> to vector<1x1x1xf32>
    %7 = vector.extract %6[0, 0, 0] : f32 from vector<1x1x1xf32>
    %8 = vector.broadcast %7 : f32 to vector<1x8x128xf32>
    %c0_3 = arith.constant 0 : index
    %c0_4 = arith.constant 0 : index
    %c0_5 = arith.constant 0 : index
    %9 = vector.load %arg3[%c0_3, %c0_4, %c0_5] : memref<1x8x128xf32, #tpu.memory_space<vmem>>, vector<1x8x128xf32>
    tpu.vector_store %arg3[%c0_3, %c0_4, %c0_5], %8 {strides = array<i32>} : memref<1x8x128xf32, #tpu.memory_space<vmem>>, vector<1x8x128xf32>,
    return
  }
  func.func @transform_0(%arg0: i32) -> (i32, i32) {
    %c0_i32 = arith.constant 0 : i32
    %c0_i32_0 = arith.constant 0 : i32
    return %arg0, %c0_i32 : i32, i32
  }
  func.func @transform_1(%arg0: i32) -> (i32, i32) {
    %c0_i32 = arith.constant 0 : i32
    %c0_i32_0 = arith.constant 0 : i32
    return %arg0, %c0_i32 : i32, i32
  }
  func.func @transform_2(%arg0: i32) -> (i32, i32, i32) {
    %c0_i32 = arith.constant 0 : i32
    %c0_i32_0 = arith.constant 0 : i32
    %c0_i32_1 = arith.constant 0 : i32
    return %arg0, %c0_i32, %c0_i32_0 : i32, i32, i32
  }
}

</mosaic_0001>

<bundles_post_ra>
// kernel: tpu_custom_call.1
= control target key start
LH: loop header
LB: loop body
LE: loop exit
PB: predicated region body
PF: predicated region fallthrough
CT: control target
= control target key end

     0   :  { %7 = vsyncpa [#allocation3], 0  ;;  %s538_s0 = inlined_call_operand.vmem [shape: f32[96,16], index: 0, kind: input, shape index: {}]   ;;  %s539_s1 = inlined_call_operand.vmem [shape: f32[96,16], index: 1, kind: input, shape index: {}]   ;;  %s540_s2 = inlined_call_operand.hbm [shape: f32[2,8,128], index: 2, kind: output, shape index: {}]  }
   0x1   :  { %9 = vsyncpa [#allocation3 + $0x1], 0  ;;  %s430_s9 = smov 0   ;;  %s432_s10 = smov 0  }
   0x2   :  { %s434_s11 = smov 0   ;;  %s436_s12 = smov 0  }
   0x3 LB: > { %s451_s13 = sadd.s32 4294967295, %s412_s12   ;;  %s298_s14 = sadd.s32 4294967294, %s412_s12   ;;  %s412_s12 = sphi %s436_s12, %s546_s12   ;;  %s408_s11 = sphi %s434_s11, %s545_s11   ;;  %s404_s10 = sphi %s432_s10, %s544_s10   ;;  %s400_s9 = sphi %s430_s9, %s543_s9  }
   0x4   : > { %s455_s15 = sadd.s32 1, %s412_s12   ;;  %s74_s16 = sadd.s32 1, %s408_s11 }
   0x5   : > { %s71_s17 = ssub.s32 %s412_s12, %s455_s15  ;;  %p84_p0 = scmp.ne.s32.totalorder %s408_s11, %s404_s10 }
   0x6   : > { %p72_p1 = scmp.eq.s32.totalorder %s71_s17, 0  ;;  %p85_p2 = scmp.eq.s32.totalorder %s451_s13, 1 }
   0x7   : > { %p90_p3 = scmp.ne.s32.totalorder %s404_s10, %s400_s9  ;;  %p91_p4 = scmp.eq.s32.totalorder %s298_s14, 1 }
   0x8   : > { %s466_s18 = scalar_select %p72_p1, %s408_s11, %s74_s16  }
   0x9   : > { %p468_p5 = por %p85_p2, %p84_p0  ;;  %p472_p6 = por %p91_p4, %p90_p3 }
   0xa   : > { %p301_p7 = scmp.ge.s32.totalorder %s412_s12, 1  ;;  %p127_p8 = scmp.lt.s32.totalorder %s412_s12, 3 }
   0xc   : > { %p128_p9 = pnand %p301_p7, %p127_p8 }
   0xd   : > { %s154_s21 = smul.u32 (!%p128_p9), 6, %s451_s13  ;;  %vm190_vm0 = vcmask (!%p128_p9), 130048   ;;  %s151_s29 = sand.u32 (!%p128_p9), 1, %s404_s10  }
   0xe   : > { %131 = sbr.rel (%p128_p9) target bundleno = 261 (0x105), region = 28  ;;  %s302_s30 = sshll.u32 (!%p128_p9), %s151_s29, 3 }
   0xf   : > { %p155_p10 = scmp.lt.s32.totalorder (!%p128_p9), %s154_s21, 11  ;;  %s153_s3 = scalar_lea.vmem (!%p128_p9), [#allocation2], %s302_s30 }
  0x10   : > { %s227_s4 = sshll.u32 (!%p128_p9), %s153_s3, 4  ;;  %s306_s5 = sshll.u32 (!%p128_p9), %s451_s13, 7  ;;  %s493_s4 = int_to_ptr.vmem [resolvable:$true] %s227_s4 }
  0x11   : > { %s498_s14 = scalar_lea.hbm (!%p128_p9), %s540_s2, %s306_s5  ;;  %s214_s16 = scalar_lea.sflag (!%p128_p9), [#allocation3], %s151_s29 }
  0x12   : > { %s350_s17 = scalar_lea.vmem (!%p128_p9), %s493_s4, 128  ;;  %s414_s13 = smov (!%p128_p9), [#allocation2]  }
  0x13   : > { %p351_p11 = scmp.ne.s32.totalorder (!%p128_p9), %s493_s4, %s350_s17 }
  0x15   : > { %s548_s21 = smov (!%p155_p10, %s154_s21), 11  ;;  %p352_p12 = pnand %p351_p11, %p468_p5 }
  0x16   : > { %s303_s22 = sshll.u32 %s548_s21, 3  ;;  %s354_s21 = sshll.u32 %s414_s13, 4  ;;  %s355_s21 = int_to_ptr.vmem [resolvable:$false] %s354_s21 }
  0x17   : > { %s158_s25 = scalar_lea.vmem %s538_s0, %s303_s22  ;;  %s164_s28 = scalar_lea.vmem %s539_s1, %s303_s22 }
  0x18   : > { %v166_v0 = vld [vmem:[%s158_s25] sm:$0xff]  ;;  %v167_v1 = vld [vmem:[%s158_s25 + $0x8] sm:$0xff]  ;;  %v168_v2 = vld [vmem:[%s158_s25 + $0x10] sm:$0xff]  ;;  %p353_p13 = pneg %p352_p12  ;;  %s356_s22 = scalar_lea.vmem %s355_s21, 256 }
  0x19   : > { %v169_v3 = vld [vmem:[%s158_s25 + $0x18] sm:$0xff]  ;;  %v170_v4 = vld [vmem:[%s158_s25 + $0x20] sm:$0xff]  ;;  %v171_v5 = vld [vmem:[%s158_s25 + $0x28] sm:$0xff]  ;;  %p357_p0 = scmp.lt.s32.totalorder %s493_s4, %s355_s21  ;;  %p358_p1 = scmp.lt.s32.totalorder %s356_s22, %s350_s17 }
  0x1a   : > { %v172_v6 = vld [vmem:[%s164_s28] sm:$0xff]  ;;  %v173_v7 = vld [vmem:[%s164_s28 + $0x8] sm:$0xff]  ;;  %v174_v8 = vld [vmem:[%s164_s28 + $0x10] sm:$0xff] }
  0x1b   : > { %v175_v9 = vld [vmem:[%s164_s28 + $0x18] sm:$0xff]  ;;  %v176_v10 = vld [vmem:[%s164_s28 + $0x20] sm:$0xff]  ;;  %v177_v11 = vld [vmem:[%s164_s28 + $0x28] sm:$0xff]  ;;  %v178_v12 = vsub.f32 %v166_v0, %v172_v6  ;;  %v179_v13 = vsub.f32 %v167_v1, %v173_v7  ;;  %v180_v14 = vsub.f32 %v168_v2, %v174_v8  ;;  %p359_p2 = por %p358_p1, %p357_p0 }
  0x1c   : > { %v181_v15 = vsub.f32 %v169_v3, %v175_v9  ;;  %v182_v16 = vsub.f32 %v170_v4, %v176_v10  ;;  %v183_v17 = vsub.f32 %v171_v5, %v177_v11 }
  0x1d   : > { %v184_v18 = vmul.f32 %v178_v12, %v178_v12  ;;  %v185_v19 = vmul.f32 %v179_v13, %v179_v13  ;;  %v186_v20 = vmul.f32 %v180_v14, %v180_v14  ;;  %p360_p3 = pnand %p359_p2, %p353_p13 }
  0x1e   : > { %v187_v21 = vmul.f32 %v181_v15, %v181_v15  ;;  %v188_v22 = vmul.f32 %v182_v16, %v182_v16  ;;  %v189_v27 = vmul.f32 %v183_v17, %v183_v17 }
  0x1f   : > { %v191_v23 = vsel %vm190_vm0, %v184_v18, 0.0  ;;  %v192_v24 = vsel %vm190_vm0, %v185_v19, 0.0  ;;  %v194_v25 = vsel %vm190_vm0, %v186_v20, 0.0 }
  0x20   : > { %v193_v26 = vadd.f32 %v192_v24, %v191_v23  ;;  %v196_v28 = vsel %vm190_vm0, %v187_v21, 0.0  ;;  %v198_v30 = vsel %vm190_vm0, %v188_v22, 0.0  ;;  %v200_v32 = vsel %vm190_vm0, %v189_v27, 0.0 }
  0x22   : > { %v195_v29 = vadd.f32 %v194_v25, %v193_v26 }
  0x24   : > { %v197_v31 = vadd.f32 %v196_v28, %v195_v29 }
  0x26   : > { %v199_v33 = vadd.f32 %v198_v30, %v197_v31 }
  0x28   : > { %v201_v34 = vadd.f32 %v200_v32, %v199_v33 }
  0x2a   : > { %202 = vadd.xlane.f32.xlu0 %v201_v34 }
  0xb7   : > { %v203_v35 = vpop.xlane.xlu0 %202 }
  0xb8   : > { %v204_v36 = vrot.slane %v203_v35, 4 }
  0xba   : > { %v205_v37 = vadd.f32 %v204_v36, %v203_v35 }
  0xbc   : > { %v206_v38 = vrot.slane %v205_v37, 2 }
  0xbe   : > { %v207_v39 = vadd.f32 %v206_v38, %v205_v37 }
  0xc0   : > { %v208_v40 = vrot.slane %v207_v39, 1 }
  0xc2   : > { %v209_v41 = vadd.f32 %v208_v40, %v207_v39 }
  0xc4   : > { %309 = vpush %v209_v41 }
  0xf5   : > { %s310_s6 = spop %309 }
  0xf6   : > { %v211_v42 = vstv %s310_s6 }
  0xf7   : > { %212 = vst [vmem:[%s153_s3] sm:$0xff] %v211_v42 }
  0xf8   : > { %363 = shalt.err (!%p360_p3)
}
  0xf9   : > { %s364_s23 = scalar_lea.hbm %s498_s14, 128  ;;  %s368_s26 = scalar_lea.hbm %s540_s2, 256 }
  0xfa   : > { %p365_p4 = scmp.ne.s32.totalorder %s498_s14, %s364_s23  ;;  %p369_p9 = scmp.lt.u32.totalorder %s498_s14, %s540_s2 }
  0xfb   : > { %p370_p10 = scmp.lt.u32.totalorder %s368_s26, %s364_s23  ;;  %p372_p12 = scmp.lt.u32.totalorder %s364_s23, %s498_s14 }
  0xfc   : > { %p366_p7 = pnand %p365_p4, %p468_p5 }
  0xfd   : > { %p371_p11 = por %p370_p10, %p369_p9 }
  0xfe   : > { %p367_p8 = pneg %p366_p7 }
  0xff   : > { %p373_p13 = por %p372_p12, %p371_p11 }
 0x101   : > { %p374_p0 = pnand %p373_p13, %p367_p8 }
 0x103   : > { %377 = shalt.err (!%p374_p0)
}
 0x104   : > { %311 = dma.vmem_to_hbm [thread:$0]  (%p468_p5), %s493_s4, 128, %s498_s14, %s214_s16  }
 0x105 PF: > { %p317_p1 = scmp.ge.s32.totalorder %s412_s12, 2  ;;  %s239_s29 = sand.u32 1, %s400_s9  }
 0x106   : > { %s240_s30 = scalar_lea.sflag [#allocation3], %s239_s29 }
 0x107   : > { %p314_p2 = pnand %p317_p1, %p472_p6 }
 0x109   : > { %395 = dma.done.wait (!%p314_p2), %s240_s30, 128  }
 0x10a   : > { %397 = vsyncadd (!%p314_p2), %s240_s30, 4294967168  ;;  %p12_p3 = scmp.ge.s32.totalorder %s455_s15, 4   ;;  %s543_s9 = smov %s404_s10 }
 0x10b   : > { %s544_s10 = smov %s408_s11  ;;  %s545_s11 = smov %s466_s18 }
 0x10c   : > { %s546_s12 = smov %s455_s15  ;;  %14 = sbr.rel (!%p12_p3) target bundleno = 3 (0x3), region = 66 }
 0x113   :  { %245 = vsyncpa [#allocation3], 1 }
 0x114   :  { %247 = vsyncpa [#allocation3 + $0x1], 1 }

</bundles_post_ra>
